<compile_context>
chip_gen: v7x
topology: tpu7x:2x2x1
jax: 0.10.0
libtpu: 0.0.40
codegen_flags: <defaults>
</compile_context>

<pallas_src>
import jax
import jax.numpy as jnp
from jax.experimental import pallas as pl
from jax.experimental.pallas import tpu as pltpu


def _scaleu_kernel(coef_ref, bs_ref, u_ref, ut_ref, x_ref, s0_ref, s1_ref, o_ref):
    # coef_ref: SMEM (2,)        (tanh(skip_scaling_i)+1 - 1) / (H*W)
    # bs_ref:   VMEM (C, 1)      tanh(b_scaling) + 1
    # u_ref:    VMEM (R, HW)     low-rank basis U  (corr = s @ U^T @ U)
    # ut_ref:   VMEM (HW, R)     U^T (precomputed; avoids in-kernel transpose)
    # x_ref, s0_ref, s1_ref: VMEM (1, C, HW)
    # o_ref:    VMEM (1, 3, C, HW)   slot 0: scaled x, slots 1/2: filtered skips
    u = u_ref[...]
    ut = ut_ref[...]

    # Slot 0: per-channel scaling of x -> one lane-dense broadcast multiply.
    o_ref[0, 0] = (x_ref[0] * bs_ref[...]).astype(o_ref.dtype)

    # Slots 1,2: Fourier filter, all channels batched into one matmul pair.
    def filt(s_ref, coef, slot):
        s = s_ref[0].astype(jnp.float32)                              # (C, HW)
        proj = jnp.dot(s, ut, preferred_element_type=jnp.float32)     # (C, R)
        corr = jnp.dot(proj, u, preferred_element_type=jnp.float32)   # (C, HW)
        o_ref[0, slot] = (s + coef * corr).astype(o_ref.dtype)

    filt(s0_ref, coef_ref[0], 1)
    filt(s1_ref, coef_ref[1], 2)


def _lowrank_basis(H, W, threshold):
    """U (R, H*W), R = 8*threshold^2, such that U^T U = Re(G_H kron G_W)."""
    t = threshold
    fu = jnp.arange(-t, t, dtype=jnp.float32)                     # (2t,)
    fv = jnp.arange(-t, t, dtype=jnp.float32)                     # (2t,)
    h = jnp.arange(H, dtype=jnp.float32)
    w = jnp.arange(W, dtype=jnp.float32)
    ph = 2.0 * jnp.pi * (fu[:, None, None, None] * h[None, None, :, None] / H
                         + fv[None, :, None, None] * w[None, None, None, :] / W)
    ph = ph.reshape(4 * t * t, H * W)                              # (4t^2, HW)
    return jnp.concatenate([jnp.cos(ph), jnp.sin(ph)], axis=0)     # (8t^2, HW)


def scaleu_forward(x, skip0, skip1, b_scaling, skip_scaling0, skip_scaling1, threshold=1):
    B, C, H, W = x.shape
    assert skip0.shape == (B, C, H, W) and skip1.shape == (B, C, H, W)
    HW = H * W

    # Parameter glue (matches the torch forward prologue).
    b_s = (jnp.tanh(b_scaling) + 1.0).astype(jnp.float32).reshape(C, 1)       # (C,1)
    scales = jnp.stack([jnp.tanh(skip_scaling0).reshape(()) + 1.0,
                        jnp.tanh(skip_scaling1).reshape(()) + 1.0]).astype(jnp.float32)
    coef = (scales - 1.0) / jnp.float32(HW)                                    # (2,)

    u = _lowrank_basis(H, W, threshold).astype(jnp.float32)                    # (R, HW)
    ut = u.T                                                                   # (HW, R)
    R = u.shape[0]

    # Lane-dense views (contiguous reshape only).
    x3 = x.reshape(B, C, HW)
    s0 = skip0.reshape(B, C, HW)
    s1 = skip1.reshape(B, C, HW)

    out = pl.pallas_call(
        _scaleu_kernel,
        out_shape=jax.ShapeDtypeStruct((B, 3, C, HW), x.dtype),
        grid=(B,),
        in_specs=[
            pl.BlockSpec(memory_space=pltpu.MemorySpace.SMEM),       # coef (2,)
            pl.BlockSpec((C, 1), lambda b: (0, 0)),                  # b_s
            pl.BlockSpec((R, HW), lambda b: (0, 0)),                 # U
            pl.BlockSpec((HW, R), lambda b: (0, 0)),                 # U^T
            pl.BlockSpec((1, C, HW), lambda b: (b, 0, 0)),           # x
            pl.BlockSpec((1, C, HW), lambda b: (b, 0, 0)),           # skip0
            pl.BlockSpec((1, C, HW), lambda b: (b, 0, 0)),           # skip1
        ],
        out_specs=pl.BlockSpec((1, 3, C, HW), lambda b: (b, 0, 0, 0)),
        compiler_params=pltpu.CompilerParams(dimension_semantics=("parallel",)),
    )(coef, b_s, u, ut, x3, s0, s1)

    # (B, 3, C, HW) row-major == (B, 3C, H, W) row-major -> free reshape.
    return out.reshape(B, 3 * C, H, W)


# ---------------- reference (pure JAX, mirrors the PyTorch code) ----------------
def _ref_fourier_filter(x, threshold, scale):
    xf = jnp.fft.fftn(x, axes=(-2, -1))
    xf = jnp.fft.fftshift(xf, axes=(-2, -1))
    B, C, H, W = xf.shape
    mask = jnp.ones((B, C, H, W), dtype=jnp.float32)
    crow, ccol = H // 2, W // 2
    mask = mask.at[..., crow - threshold:crow + threshold,
                        ccol - threshold:ccol + threshold].set(scale)
    xf = xf * mask
    xf = jnp.fft.ifftshift(xf, axes=(-2, -1))
    return jnp.real(jnp.fft.ifftn(xf, axes=(-2, -1))).astype(x.dtype)


def _ref_forward(x, skips, b_scaling, skip_scalings):
    b_s = jnp.tanh(b_scaling) + 1.0
    filtered = [_ref_fourier_filter(s, 1, jnp.tanh(w).reshape(()) + 1.0)
                for s, w in zip(skips, skip_scalings)]
    x_scaled = jnp.einsum('bchw,c->bchw', x, b_s)
    return jnp.concatenate([x_scaled] + filtered, axis=1)


if __name__ == "__main__":
    B, C, H, W = 2, 4, 16, 16
    key = jax.random.PRNGKey(0)
    kx, k0, k1, kb, kw0, kw1 = jax.random.split(key, 6)

    x = jax.random.normal(kx, (B, C, H, W), dtype=jnp.float32)
    skip0 = jax.random.normal(k0, (B, C, H, W), dtype=jnp.float32)
    skip1 = jax.random.normal(k1, (B, C, H, W), dtype=jnp.float32)

    # Deterministic (non-trivial) parameters; shapes from the module __init__.
    b_scaling = 0.5 * jax.random.normal(kb, (C,), dtype=jnp.float32)
    skip_scaling0 = 0.5 * jax.random.normal(kw0, (1,), dtype=jnp.float32)
    skip_scaling1 = 0.5 * jax.random.normal(kw1, (1,), dtype=jnp.float32)

    out = scaleu_forward(x, skip0, skip1, b_scaling, skip_scaling0, skip_scaling1)
    out = jax.block_until_ready(out)

    ref = _ref_forward(x, [skip0, skip1], b_scaling, [skip_scaling0, skip_scaling1])
    ref = jax.block_until_ready(ref)

    assert out.shape == (B, 3 * C, H, W)
    assert jnp.allclose(out, ref, atol=2e-3, rtol=2e-3)
    print("KERNEL_OK")
</pallas_src>

<mosaic_0001>
module attributes {stable_mosaic.version = 11 : i64} {
  func.func @_scaleu_kernel(%arg0: i32, %arg1: memref<2xf32, #tpu.memory_space<smem>>, %arg2: memref<4x1xf32, #tpu.memory_space<vmem>>, %arg3: memref<8x256xf32, #tpu.memory_space<vmem>>, %arg4: memref<256x8xf32, #tpu.memory_space<vmem>>, %arg5: memref<1x4x256xf32, #tpu.memory_space<vmem>>, %arg6: memref<1x4x256xf32, #tpu.memory_space<vmem>>, %arg7: memref<1x4x256xf32, #tpu.memory_space<vmem>>, %arg8: memref<1x3x4x256xf32, #tpu.memory_space<vmem>>) attributes {dimension_semantics = [#tpu.dimension_semantics<parallel>], iteration_bounds = array<i64: 2>, scalar_prefetch = 0 : i64, scratch_operands = 0 : i64, tpu.core_type = #tpu.core_type<tc>, window_params = [{transform_indices = @transform_0, window_bounds = array<i64: 2>}, {pipeline_mode = #tpu.pipeline_mode<synchronous>, transform_indices = @transform_1, window_bounds = array<i64: 4, 1>}, {pipeline_mode = #tpu.pipeline_mode<synchronous>, transform_indices = @transform_2, window_bounds = array<i64: 8, 256>}, {pipeline_mode = #tpu.pipeline_mode<synchronous>, transform_indices = @transform_3, window_bounds = array<i64: 256, 8>}, {transform_indices = @transform_4, window_bounds = array<i64: 1, 4, 256>}, {transform_indices = @transform_5, window_bounds = array<i64: 1, 4, 256>}, {transform_indices = @transform_6, window_bounds = array<i64: 1, 4, 256>}, {transform_indices = @transform_7, window_bounds = array<i64: 1, 3, 4, 256>}]} {
    %c0 = arith.constant 0 : index
    %c0_0 = arith.constant 0 : index
    %0 = vector.load %arg3[%c0, %c0_0] : memref<8x256xf32, #tpu.memory_space<vmem>>, vector<8x256xf32>
    %c0_1 = arith.constant 0 : index
    %c0_2 = arith.constant 0 : index
    %1 = vector.load %arg4[%c0_1, %c0_2] : memref<256x8xf32, #tpu.memory_space<vmem>>, vector<256x8xf32>
    %c0_3 = arith.constant 0 : index
    %c0_4 = arith.constant 0 : index
    %c0_5 = arith.constant 0 : index
    %2 = vector.load %arg5[%c0_3, %c0_4, %c0_5] : memref<1x4x256xf32, #tpu.memory_space<vmem>>, vector<1x4x256xf32>
    %3 = vector.shape_cast %2 : vector<1x4x256xf32> to vector<4x256xf32>
    %c0_6 = arith.constant 0 : index
    %c0_7 = arith.constant 0 : index
    %4 = vector.load %arg2[%c0_6, %c0_7] : memref<4x1xf32, #tpu.memory_space<vmem>>, vector<4x1xf32>
    %5 = vector.broadcast %4 : vector<4x1xf32> to vector<4x256xf32>
    %6 = arith.mulf %3, %5 : vector<4x256xf32>
    %c0_8 = arith.constant 0 : index
    %c0_9 = arith.constant 0 : index
    %c0_10 = arith.constant 0 : index
    %c0_11 = arith.constant 0 : index
    %7 = vector.load %arg8[%c0_8, %c0_9, %c0_10, %c0_11] : memref<1x3x4x256xf32, #tpu.memory_space<vmem>>, vector<1x1x4x256xf32>
    %8 = vector.shape_cast %7 : vector<1x1x4x256xf32> to vector<4x256xf32>
    %9 = vector.shape_cast %6 : vector<4x256xf32> to vector<1x1x4x256xf32>
    tpu.vector_store %arg8[%c0_8, %c0_9, %c0_10, %c0_11], %9 {strides = array<i32>} : memref<1x3x4x256xf32, #tpu.memory_space<vmem>>, vector<1x1x4x256xf32>,
    %c0_12 = arith.constant 0 : index
    %10 = memref.load %arg1[%c0_12] : memref<2xf32, #tpu.memory_space<smem>>
    %c0_13 = arith.constant 0 : index
    %c0_14 = arith.constant 0 : index
    %c0_15 = arith.constant 0 : index
    %11 = vector.load %arg6[%c0_13, %c0_14, %c0_15] : memref<1x4x256xf32, #tpu.memory_space<vmem>>, vector<1x4x256xf32>
    %12 = vector.shape_cast %11 : vector<1x4x256xf32> to vector<4x256xf32>
    %cst = arith.constant dense<0.000000e+00> : vector<4x8xf32>
    %13 = tpu.matmul %12, %1, %cst {dimension_numbers = #tpu.dot_dimension_numbers<[1], [0], [0], [1], [0, 0, 1, 1], [], []>} : vector<4x256xf32>, vector<256x8xf32>, vector<4x8xf32> -> vector<4x8xf32>
    %cst_16 = arith.constant dense<0.000000e+00> : vector<4x256xf32>
    %14 = tpu.matmul %13, %0, %cst_16 {dimension_numbers = #tpu.dot_dimension_numbers<[1], [0], [0], [1], [0, 0, 1, 1], [], []>} : vector<4x8xf32>, vector<8x256xf32>, vector<4x256xf32> -> vector<4x256xf32>
    %15 = vector.broadcast %10 : f32 to vector<4x256xf32>
    %16 = arith.mulf %15, %14 : vector<4x256xf32>
    %17 = arith.addf %12, %16 : vector<4x256xf32>
    %c0_17 = arith.constant 0 : index
    %c1 = arith.constant 1 : index
    %c0_18 = arith.constant 0 : index
    %c0_19 = arith.constant 0 : index
    %18 = vector.load %arg8[%c0_17, %c1, %c0_18, %c0_19] : memref<1x3x4x256xf32, #tpu.memory_space<vmem>>, vector<1x1x4x256xf32>
    %19 = vector.shape_cast %18 : vector<1x1x4x256xf32> to vector<4x256xf32>
    %20 = vector.shape_cast %17 : vector<4x256xf32> to vector<1x1x4x256xf32>
    tpu.vector_store %arg8[%c0_17, %c1, %c0_18, %c0_19], %20 {strides = array<i32>} : memref<1x3x4x256xf32, #tpu.memory_space<vmem>>, vector<1x1x4x256xf32>,
    %c1_20 = arith.constant 1 : index
    %21 = memref.load %arg1[%c1_20] : memref<2xf32, #tpu.memory_space<smem>>
    %c0_21 = arith.constant 0 : index
    %c0_22 = arith.constant 0 : index
    %c0_23 = arith.constant 0 : index
    %22 = vector.load %arg7[%c0_21, %c0_22, %c0_23] : memref<1x4x256xf32, #tpu.memory_space<vmem>>, vector<1x4x256xf32>
    %23 = vector.shape_cast %22 : vector<1x4x256xf32> to vector<4x256xf32>
    %cst_24 = arith.constant dense<0.000000e+00> : vector<4x8xf32>
    %24 = tpu.matmul %23, %1, %cst_24 {dimension_numbers = #tpu.dot_dimension_numbers<[1], [0], [0], [1], [0, 0, 1, 1], [], []>} : vector<4x256xf32>, vector<256x8xf32>, vector<4x8xf32> -> vector<4x8xf32>
    %cst_25 = arith.constant dense<0.000000e+00> : vector<4x256xf32>
    %25 = tpu.matmul %24, %0, %cst_25 {dimension_numbers = #tpu.dot_dimension_numbers<[1], [0], [0], [1], [0, 0, 1, 1], [], []>} : vector<4x8xf32>, vector<8x256xf32>, vector<4x256xf32> -> vector<4x256xf32>
    %26 = vector.broadcast %21 : f32 to vector<4x256xf32>
    %27 = arith.mulf %26, %25 : vector<4x256xf32>
    %28 = arith.addf %23, %27 : vector<4x256xf32>
    %c0_26 = arith.constant 0 : index
    %c2 = arith.constant 2 : index
    %c0_27 = arith.constant 0 : index
    %c0_28 = arith.constant 0 : index
    %29 = vector.load %arg8[%c0_26, %c2, %c0_27, %c0_28] : memref<1x3x4x256xf32, #tpu.memory_space<vmem>>, vector<1x1x4x256xf32>
    %30 = vector.shape_cast %29 : vector<1x1x4x256xf32> to vector<4x256xf32>
    %31 = vector.shape_cast %28 : vector<4x256xf32> to vector<1x1x4x256xf32>
    tpu.vector_store %arg8[%c0_26, %c2, %c0_27, %c0_28], %31 {strides = array<i32>} : memref<1x3x4x256xf32, #tpu.memory_space<vmem>>, vector<1x1x4x256xf32>,
    return
  }
  func.func @transform_0(%arg0: i32) -> i32 {
    %c0_i32 = arith.constant 0 : i32
    %c0_i32_0 = arith.constant 0 : i32
    return %c0_i32 : i32
  }
  func.func @transform_1(%arg0: i32) -> (i32, i32) {
    %c0_i32 = arith.constant 0 : i32
    %c0_i32_0 = arith.constant 0 : i32
    %c0_i32_1 = arith.constant 0 : i32
    return %c0_i32, %c0_i32_0 : i32, i32
  }
  func.func @transform_2(%arg0: i32) -> (i32, i32) {
    %c0_i32 = arith.constant 0 : i32
    %c0_i32_0 = arith.constant 0 : i32
    %c0_i32_1 = arith.constant 0 : i32
    return %c0_i32, %c0_i32_0 : i32, i32
  }
  func.func @transform_3(%arg0: i32) -> (i32, i32) {
    %c0_i32 = arith.constant 0 : i32
    %c0_i32_0 = arith.constant 0 : i32
    %c0_i32_1 = arith.constant 0 : i32
    return %c0_i32, %c0_i32_0 : i32, i32
  }
  func.func @transform_4(%arg0: i32) -> (i32, i32, i32) {
    %c0_i32 = arith.constant 0 : i32
    %c0_i32_0 = arith.constant 0 : i32
    %c0_i32_1 = arith.constant 0 : i32
    return %arg0, %c0_i32, %c0_i32_0 : i32, i32, i32
  }
  func.func @transform_5(%arg0: i32) -> (i32, i32, i32) {
    %c0_i32 = arith.constant 0 : i32
    %c0_i32_0 = arith.constant 0 : i32
    %c0_i32_1 = arith.constant 0 : i32
    return %arg0, %c0_i32, %c0_i32_0 : i32, i32, i32
  }
  func.func @transform_6(%arg0: i32) -> (i32, i32, i32) {
    %c0_i32 = arith.constant 0 : i32
    %c0_i32_0 = arith.constant 0 : i32
    %c0_i32_1 = arith.constant 0 : i32
    return %arg0, %c0_i32, %c0_i32_0 : i32, i32, i32
  }
  func.func @transform_7(%arg0: i32) -> (i32, i32, i32, i32) {
    %c0_i32 = arith.constant 0 : i32
    %c0_i32_0 = arith.constant 0 : i32
    %c0_i32_1 = arith.constant 0 : i32
    %c0_i32_2 = arith.constant 0 : i32
    return %arg0, %c0_i32, %c0_i32_0, %c0_i32_1 : i32, i32, i32, i32
  }
}

</mosaic_0001>

<bundles_post_ra>
// kernel: tpu_custom_call.1
= control target key start
LH: loop header
LB: loop body
LE: loop exit
PB: predicated region body
PF: predicated region fallthrough
CT: control target
= control target key end

     0   :  { %12 = vsyncpa [#allocation4], 0  ;;  %s1448_s0 = inlined_call_operand.vmem [shape: f32[2], index: 0, kind: input, shape index: {}]   ;;  %s1449_s1 = inlined_call_operand.vmem [shape: f32[4,1], index: 1, kind: input, shape index: {}]   ;;  %s1450_s2 = inlined_call_operand.vmem [shape: f32[8,256], index: 2, kind: input, shape index: {}]   ;;  %s1451_s3 = inlined_call_operand.vmem [shape: f32[256,8], index: 3, kind: input, shape index: {}]   ;;  %s1452_s4 = inlined_call_operand.vmem [shape: f32[2,4,256], index: 4, kind: input, shape index: {}]   ;;  %s1453_s5 = inlined_call_operand.vmem [shape: f32[2,4,256], index: 5, kind: input, shape index: {}]   ;;  %s1454_s6 = inlined_call_operand.vmem [shape: f32[2,4,256], index: 6, kind: input, shape index: {}]   ;;  %s1455_s7 = inlined_call_operand.hbm [shape: f32[2,3,4,256], index: 7, kind: output, shape index: {}]  }
   0x1   :  { %13 = vsyncpa [#allocation3], 0 }
   0x2   :  { %15 = vsyncpa [#allocation3 + $0x1], 0  ;;  %s1159_s24 = smov 0   ;;  %s1161_s25 = smov 0  }
   0x3   :  { %s1163_s26 = smov 0   ;;  %s1165_s27 = smov 0  }
   0x4 LB: > { %s1180_s28 = sadd.s32 4294967295, %s1110_s27   ;;  %s812_s29 = sadd.s32 4294967294, %s1110_s27   ;;  %s1110_s27 = sphi %s1165_s27, %s1462_s27   ;;  %s1106_s26 = sphi %s1163_s26, %s1461_s26   ;;  %s1102_s25 = sphi %s1161_s25, %s1460_s25   ;;  %s1098_s24 = sphi %s1159_s24, %s1459_s24  }
   0x5   : > { %s1184_s30 = sadd.s32 1, %s1110_s27   ;;  %s190_s8 = sadd.s32 1, %s1106_s26 }
   0x6   : > { %s187_s9 = ssub.s32 %s1110_s27, %s1184_s30  ;;  %p200_p0 = scmp.ne.s32.totalorder %s1106_s26, %s1102_s25 }
   0x7   : > { %p188_p1 = scmp.eq.s32.totalorder %s187_s9, 0  ;;  %p201_p2 = scmp.eq.s32.totalorder %s1180_s28, 1 }
   0x8   : > { %p206_p3 = scmp.ne.s32.totalorder %s1102_s25, %s1098_s24  ;;  %p207_p4 = scmp.eq.s32.totalorder %s812_s29, 1 }
   0x9   : > { %s1195_s10 = scalar_select %p188_p1, %s1106_s26, %s190_s8  }
   0xa   : > { %p1197_p5 = por %p201_p2, %p200_p0  ;;  %p1201_p6 = por %p207_p4, %p206_p3 }
   0xb   : > { %p813_p7 = scmp.ge.s32.totalorder %s1110_s27, 1  ;;  %p214_p8 = scmp.lt.s32.totalorder %s1110_s27, 3 }
   0xc   : > { %p985_p9 = scmp.eq.s32.totalorder %s1180_s28, 0  ;;  %s227_s16 = sshll.u32 %s1448_s0, 4  ;;  %s228_s16 = int_to_ptr.vmem [resolvable:$true] %s227_s16 }
   0xd   : > { %p1208_p10 = pnand %p813_p7, %p214_p8  ;;  %s1029_s17 = scalar_lea.vmem %s228_s16, 16 }
   0xe   : > { %p1030_p13 = scmp.ne.s32.totalorder %s228_s16, %s1029_s17  ;;  %p1037_p3 = scmp.lt.s32.totalorder %s228_s16, %s228_s16 }
   0xf   : > { %p977_p11 = pneg %p1208_p10  ;;  %p1038_p4 = scmp.lt.s32.totalorder %s1029_s17, %s1029_s17 }
  0x11   : > { %p978_p12 = pnand %p985_p9, %p977_p11  ;;  %p1039_p7 = por %p1038_p4, %p1037_p3 }
  0x13   : > { %p1031_p0 = pneg %p978_p12 }
  0x15   : > { %p1032_p1 = pnand %p1031_p0, %p1030_p13 }
  0x17   : > { %p1033_p2 = pneg %p1032_p1 }
  0x19   : > { %p1040_p8 = pnand %p1039_p7, %p1033_p2 }
  0x1b   : > { %1043 = shalt.err (!%p1040_p8)
}
  0x1c   : > { %s1112_s18 = smov [#allocation2]   ;;  %273 = sbr.rel (%p1208_p10) target bundleno = 769 (0x301), region = 48 }
  0x1d   : > { %980 = dma.vmem_to_smem (!%p978_p12), %s228_s16, 16, %s1112_s18, [#allocation4]  }
  0x23   : > { %1089 = dma.done.wait (%p985_p9), [#allocation4], 16  }
  0x24   : > { %1091 = vsyncadd (%p985_p9), [#allocation4], 4294967280 }
  0x25   : > { %279 = sfence }
  0x26   : > { %v349_v0 = vld [vmem:[%s1451_s3 + $0x80] sm:$0xff]  ;;  %v350_v1 = vld [vmem:[%s1451_s3 + $0x88] sm:$0xff]  ;;  %p316_p10 = scmp.lt.s32.totalorder %s1180_s28, 1  ;;  %v351_v5 = vld [vmem:[%s1451_s3 + $0x90] sm:$0xff]  ;;  %v1113_v52 = vmov 0.0   ;;  %vm456_vm0 = vcmask 64512  }
  0x27   : > { %v333_v2 = vld [vmem:[%s1451_s3] sm:$0xff]  ;;  %v1235_v3 = vpack.c.bf16 %v350_v1, %v349_v0  ;;  %v334_v4 = vld [vmem:[%s1451_s3 + $0x8] sm:$0xff]  ;;  %v352_v6 = vld [vmem:[%s1451_s3 + $0x98] sm:$0xff]  ;;  %524 = vmatprep.mubr.f32.mxu1 %v1113_v52  ;;  %v1114_v59 = vmov 0   ;;  %s381_s17 = sld [smem:[#allocation2]]  ;;  %s313_s18 = sand.u32 1, %s1102_s25  }
  0x28   : > { %v1246_v7 = vpack.c.bf16 %v334_v4, %v333_v2  ;;  %v1248_v8 = vpack.c.bf16 %v352_v6, %v351_v5  ;;  %v335_v9 = vld [vmem:[%s1451_s3 + $0x10] sm:$0xff]  ;;  %v336_v10 = vld [vmem:[%s1451_s3 + $0x18] sm:$0xff]  ;;  %v353_v11 = vld [vmem:[%s1451_s3 + $0xa0] sm:$0xff]  ;;  %s317_s23 = scalar_select %p316_p10, %s1180_s28, 1  ;;  %1026 = vset.pattern.permute.xlu0 %v1114_v59  ;;  %v1115_v6 = vmov 839922192  }
  0x29   : > { %906 = vmatprep.subr.bf16.mxu0 %v1235_v3  ;;  %v354_v12 = vld [vmem:[%s1451_s3 + $0xa8] sm:$0xff]  ;;  %v1265_v13 = vpack.c.bf16 %v336_v10, %v335_v9  ;;  %v337_v15 = vld [vmem:[%s1451_s3 + $0x20] sm:$0xff]  ;;  %v355_v17 = vld [vmem:[%s1451_s3 + $0xb0] sm:$0xff]  ;;  %s969_s19 = smul.u32 24, %s313_s18  ;;  %s826_s29 = sld [smem:[#allocation2 + $0x1]] }
  0x2a   : > { %908 = vmatpush3.bf16.msra.mxu0 %v1246_v7  ;;  %s1267_s9 = sshll.u32 %s317_s23, 3  ;;  %v1270_v14 = vpack.c.bf16 %v354_v12, %v353_v11  ;;  %v338_v16 = vld [vmem:[%s1451_s3 + $0x28] sm:$0xff]  ;;  %v356_v18 = vld [vmem:[%s1451_s3 + $0xb8] sm:$0xff]  ;;  %v339_v21 = vld [vmem:[%s1451_s3 + $0x30] sm:$0xff]  ;;  %s970_s8 = smul.u32 384, %s1180_s28 }
  0x2b   : > { %910 = vmatprep.subr.bf16.mxu0 %v1248_v8  ;;  %s325_s23 = scalar_lea.vmem %s1453_s5, %s1267_s9  ;;  %v1289_v19 = vpack.c.bf16 %v338_v16, %v337_v15  ;;  %v1292_v20 = vpack.c.bf16 %v356_v18, %v355_v17  ;;  %v340_v22 = vld [vmem:[%s1451_s3 + $0x38] sm:$0xff]  ;;  %v357_v23 = vld [vmem:[%s1451_s3 + $0xc0] sm:$0xff]  ;;  %v358_v24 = vld [vmem:[%s1451_s3 + $0xc8] sm:$0xff]  ;;  %s330_s14 = scalar_lea.vmem %s1454_s6, %s1267_s9 }
  0x2c   : > { %v1306_v25 = vld [vmem:[%s325_s23] sm:$0xff]  ;;  %v919_v27 = vpack.c.bf16 %v340_v22, %v339_v21  ;;  %v921_v28 = vpack.c.bf16 %v358_v24, %v357_v23  ;;  %v342_v30 = vld [vmem:[%s1451_s3 + $0x48] sm:$0xff]  ;;  %v359_v31 = vld [vmem:[%s1451_s3 + $0xd0] sm:$0xff]  ;;  %s1385_s20 = scalar_lea.vmem [#allocation5], %s969_s19  ;;  %s320_s23 = scalar_lea.vmem %s1452_s4, %s1267_s9 }
  0x2d   : > { %v384_v26 = vcombine.high %v1306_v25, %v1306_v25  ;;  %v341_v29 = vld [vmem:[%s1451_s3 + $0x40] sm:$0xff]  ;;  %v360_v32 = vld [vmem:[%s1451_s3 + $0xd8] sm:$0xff]  ;;  %v343_v35 = vld [vmem:[%s1451_s3 + $0x50] sm:$0xff]  ;;  %v531_v60 = vstv %s381_s17  ;;  %s714_s13 = sshll.u32 %s1385_s20, 4  ;;  %s1401_s15 = scalar_lea.hbm %s1455_s7, %s970_s8  ;;  %s1396_s13 = int_to_ptr.vmem [resolvable:$true] %s714_s13 }
  0x2e   : > { %912 = vmatpush3.bf16.msra.mxu0 %v1265_v13  ;;  %v923_v33 = vpack.c.bf16 %v342_v30, %v341_v29  ;;  %v925_v34 = vpack.c.bf16 %v360_v32, %v359_v31  ;;  %v344_v36 = vld [vmem:[%s1451_s3 + $0x58] sm:$0xff]  ;;  %v361_v37 = vld [vmem:[%s1451_s3 + $0xe0] sm:$0xff]  ;;  %v362_v38 = vld [vmem:[%s1451_s3 + $0xe8] sm:$0xff]  ;;  %s1407_s16 = scalar_lea.sflag [#allocation3], %s313_s18  ;;  %s1044_s28 = scalar_lea.vmem %s1396_s13, 384 }
  0x2f   : > { %914 = vmatprep.subr.bf16.mxu0 %v1270_v14  ;;  %450 = vmatprep.mubr.f32.mxu0 %v384_v26  ;;  %v927_v39 = vpack.c.bf16 %v344_v36, %v343_v35  ;;  %v929_v40 = vpack.c.bf16 %v362_v38, %v361_v37  ;;  %v345_v41 = vld [vmem:[%s1451_s3 + $0x60] sm:$0xff]  ;;  %v346_v42 = vld [vmem:[%s1451_s3 + $0x68] sm:$0xff]  ;;  %v363_v43 = vld [vmem:[%s1451_s3 + $0xf0] sm:$0xff]  ;;  %v690_v16 = vstv %s826_s29  ;;  %p1045_p9 = scmp.ne.s32.totalorder %s1396_s13, %s1044_s28  ;;  %s1116_s17 = smov [#allocation5]  }
  0x30   : > { %v364_v44 = vld [vmem:[%s1451_s3 + $0xf8] sm:$0xff]  ;;  %v931_v45 = vpack.c.bf16 %v346_v42, %v345_v41  ;;  %v347_v47 = vld [vmem:[%s1451_s3 + $0x70] sm:$0xff]  ;;  %v332_v50 = vld [vmem:[%s1450_s2 + $0x8] sm:$0xff]  ;;  %s1048_s19 = sshll.u32 %s1116_s17, 4  ;;  %s1049_s19 = int_to_ptr.vmem [resolvable:$false] %s1048_s19 }
  0x31   : > { %v933_v46 = vpack.c.bf16 %v364_v44, %v363_v43  ;;  %v348_v48 = vld [vmem:[%s1451_s3 + $0x78] sm:$0xff]  ;;  %460 = vmatprep.subr.mxu1 %v332_v50  ;;  %v331_v51 = vld [vmem:[%s1450_s2] sm:$0xff]  ;;  %p1046_p11 = pnand %p1045_p9, %p1197_p5  ;;  %s1050_s21 = scalar_lea.vmem %s1049_s19, 768 }
  0x32   : > { %916 = vmatpush3.bf16.msra.mxu0 %v1289_v19  ;;  %v935_v49 = vpack.c.bf16 %v348_v48, %v347_v47  ;;  %461 = vmatpush1.msra.mxu1 %v331_v51  ;;  %v1366_v53 = vld [vmem:[%s330_s14] sm:$0xff]  ;;  %p1051_p13 = scmp.lt.s32.totalorder %s1396_s13, %s1049_s19  ;;  %p1052_p0 = scmp.lt.s32.totalorder %s1050_s21, %s1044_s28 }
  0x33   : > { %918 = vmatprep.subr.bf16.mxu0 %v1292_v20  ;;  %938 = vmatprep.subr.bf16.mxu1 %v1235_v3  ;;  %v544_v56 = vcombine.high %v1366_v53, %v1366_v53  ;;  %v366_v58 = vld [vmem:[%s1449_s1] sm:$0xf]  ;;  %p1047_p12 = pneg %p1046_p11 }
  0x34   : > { %369 = vperm.xlu0 %1026, %v366_v58   ;;  %p1053_p1 = por %p1052_p0, %p1051_p13 }
  0x36   : > { %920 = vmatpush3.bf16.msra.mxu0 %v919_v27  ;;  %p1054_p2 = pnand %p1053_p1, %p1047_p12 }
  0x37   : > { %922 = vmatprep.subr.bf16.mxu0 %v921_v28 }
  0x3a   : > { %924 = vmatpush3.bf16.msra.mxu0 %v923_v33 }
  0x3b   : > { %926 = vmatprep.subr.bf16.mxu0 %v925_v34 }
  0x3e   : > { %928 = vmatpush3.bf16.msra.mxu0 %v927_v39 }
  0x3f   : > { %930 = vmatprep.subr.bf16.mxu0 %v929_v40 }
  0x42   : > { %932 = vmatpush3.bf16.msra.mxu0 %v931_v45 }
  0x43   : > { %934 = vmatprep.subr.bf16.mxu0 %v933_v46 }
  0x46   : > { %936 = vmatpush3.bf16.msra.mxu0 %v935_v49 }
  0x47   : > { %619 = vmatprep.subr.mxu0 %v332_v50 }
  0x49   : > { %451 = vmatmul.mubr.f32.vlgmr.msra.gmra.mrb[0].mxu0 %v1306_v25 }
  0x4a   : > { %620 = vmatpush1.msra.mxu0 %v331_v51  ;;  %683 = vmatprep.mubr.f32.mxu0 %v1113_v52 }
  0xb3   : > { %v370_v12 = vpop.permute.xlu0 %369 }
 0x11c   : > { %v867_v54 = vpop.f32.mrb[0].mxu0 }
 0x11d   : > { %v868_v55 = vpop.f32.mrb[1].mxu0 }
 0x11e   : > { %v869_v57 = vadd.f32 %v868_v55, %v867_v54 }
 0x120   : > { %824 = vmatmul.mubr.msk.f32.vlgmr.msra.gmra.mrb[0].mxu1 %vm456_vm0, %v869_v57 }
 0x121   : > { %940 = vmatpush3.bf16.msra.mxu1 %v1246_v7  ;;  %610 = vmatprep.mubr.f32.mxu1 %v544_v56  ;;  %v372_v7 = vunpack.c.l.s4 %v1115_v6 }
 0x122   : > { %942 = vmatprep.subr.bf16.mxu1 %v1248_v8  ;;  %v374_v8 = vlaneseq }
 0x123   : > { %v373_v9 = vunpack.c.0.s8 %v372_v7 }
 0x124   : > { %v375_v10 = vshrl.u32 %v374_v8, 7 }
 0x125   : > { %944 = vmatpush3.bf16.msra.mxu1 %v1265_v13 }
 0x126   : > { %946 = vmatprep.subr.bf16.mxu1 %v1270_v14  ;;  %v376_v11 = vsub.s32 %v373_v9, %v375_v10  ;;  %v365_v14 = vld [vmem:[%s320_s23] sm:$0xff] }
 0x128   : > { %v377_v13 = vrot.slane %v370_v12, %v376_v11 }
 0x129   : > { %948 = vmatpush3.bf16.msra.mxu1 %v1289_v19 }
 0x12a   : > { %950 = vmatprep.subr.bf16.mxu1 %v1292_v20  ;;  %v379_v15 = vmul.f32 %v377_v13, %v365_v14 }
 0x12c   : > { %380 = vst [vmem:[%s1385_s20] sm:$0xff] %v379_v15 }
 0x12d   : > { %952 = vmatpush3.bf16.msra.mxu1 %v919_v27 }
 0x12e   : > { %954 = vmatprep.subr.bf16.mxu1 %v921_v28 }
 0x131   : > { %956 = vmatpush3.bf16.msra.mxu1 %v923_v33 }
 0x132   : > { %958 = vmatprep.subr.bf16.mxu1 %v925_v34 }
 0x135   : > { %960 = vmatpush3.bf16.msra.mxu1 %v927_v39 }
 0x136   : > { %962 = vmatprep.subr.bf16.mxu1 %v929_v40 }
 0x139   : > { %964 = vmatpush3.bf16.msra.mxu1 %v931_v45 }
 0x13a   : > { %966 = vmatprep.subr.bf16.mxu1 %v933_v46 }
 0x13d   : > { %968 = vmatpush3.bf16.msra.mxu1 %v935_v49 }
 0x140   : > { %611 = vmatmul.mubr.f32.vlgmr.msra.gmra.mrb[2].mxu1 %v1366_v53 }
 0x1f3   : > { %v526_v61 = vpop.f32.mrb[0].mxu1 }
 0x1f4   : > { %v532_v62 = vmul.f32 %v531_v60, %v526_v61  ;;  %v528_v63 = vpop.f32.mrb[1].mxu1 }
 0x1f5   : > { %v533_v0 = vmul.f32 %v531_v60, %v528_v63 }
 0x1f7   : > { %v536_v1 = vcombine.low %v532_v62, %v533_v0 }
 0x1f9   : > { %v538_v2 = vadd.f32 %v536_v1, %v1306_v25 }
 0x1fb   : > { %825 = vst [vmem:[%s1385_s20 + $0x8] sm:$0xff] %v538_v2 }
 0x213   : > { %v902_v3 = vpop.f32.mrb[2].mxu1 }
 0x214   : > { %v903_v4 = vpop.f32.mrb[3].mxu1 }
 0x215   : > { %v904_v5 = vadd.f32 %v903_v4, %v902_v3 }
 0x217   : > { %827 = vmatmul.mubr.msk.f32.vlgmr.msra.gmra.mrb[2].mxu0 %vm456_vm0, %v904_v5 }
 0x2ea   : > { %v685_v17 = vpop.f32.mrb[2].mxu0 }
 0x2eb   : > { %v691_v18 = vmul.f32 %v690_v16, %v685_v17  ;;  %v687_v19 = vpop.f32.mrb[3].mxu0 }
 0x2ec   : > { %v692_v20 = vmul.f32 %v690_v16, %v687_v19 }
 0x2ee   : > { %v695_v21 = vcombine.low %v691_v18, %v692_v20 }
 0x2f0   : > { %v697_v22 = vadd.f32 %v695_v21, %v1366_v53 }
 0x2f2   : > { %828 = vst [vmem:[%s1385_s20 + $0x10] sm:$0xff] %v697_v22 }
 0x2f3   : > { %1057 = shalt.err (!%p1054_p2)
}
 0x2f4   : > { %s1058_s18 = scalar_lea.hbm %s1401_s15, 384  ;;  %s1062_s23 = scalar_lea.hbm %s1455_s7, 768 }
 0x2f5   : > { %p1059_p3 = scmp.ne.s32.totalorder %s1401_s15, %s1058_s18  ;;  %p1063_p8 = scmp.lt.u32.totalorder %s1401_s15, %s1455_s7 }
 0x2f6   : > { %p1064_p10 = scmp.lt.u32.totalorder %s1062_s23, %s1058_s18  ;;  %p1066_p11 = scmp.lt.u32.totalorder %s1058_s18, %s1401_s15 }
 0x2f7   : > { %p1060_p4 = pnand %p1059_p3, %p1197_p5 }
 0x2f8   : > { %p1065_p9 = por %p1064_p10, %p1063_p8 }
 0x2f9   : > { %p1061_p7 = pneg %p1060_p4 }
 0x2fa   : > { %p1067_p12 = por %p1066_p11, %p1065_p9 }
 0x2fc   : > { %p1068_p13 = pnand %p1067_p12, %p1061_p7 }
 0x2fe   : > { %1071 = shalt.err (!%p1068_p13)
}
 0x2ff   : > { %s1117_s14 = smov 128   ;;  %s1118_s9 = smov 8  }
 0x300   : > { %975 = dma.vmem_to_hbm [thread:$0]  (%p1197_p5), %s1396_s13, 384, %s1401_s15, %s1407_s16, %s1117_s14, %s1117_s14, %s1118_s9  }
 0x301 PF: > { %p987_p0 = scmp.ge.s32.totalorder %s1110_s27, 2  ;;  %s729_s28 = sand.u32 1, %s1098_s24  }
 0x302   : > { %s730_s17 = scalar_lea.sflag [#allocation3], %s729_s28 }
 0x303   : > { %p982_p1 = pnand %p987_p0, %p1201_p6 }
 0x305   : > { %1093 = dma.done.wait (!%p982_p1), %s730_s17, 384  }
 0x306   : > { %1095 = vsyncadd (!%p982_p1), %s730_s17, 4294966912  ;;  %p18_p2 = scmp.ge.s32.totalorder %s1184_s30, 4   ;;  %s1459_s24 = smov %s1102_s25 }
 0x307   : > { %s1460_s25 = smov %s1106_s26  ;;  %s1461_s26 = smov %s1195_s10 }
 0x308   : > { %s1462_s27 = smov %s1184_s30  ;;  %20 = sbr.rel (!%p18_p2) target bundleno = 4 (0x4), region = 96 }
 0x30f   :  { %735 = vsyncpa [#allocation3], 1 }
 0x310   :  { %737 = vsyncpa [#allocation3 + $0x1], 1 }
 0x311   :  { %738 = vsyncpa [#allocation4], 1 }
 0x312   :  { %740 = vsyncpa [#allocation4 + $0x1], 1 }

</bundles_post_ra>
